<compile_context>
chip_gen: v6e
topology: v6e:2x2x1
jax: 0.10.0
libtpu: 0.0.40
codegen_flags: <defaults>
</compile_context>

<pallas_src>
import functools

import jax
import jax.numpy as jnp
from jax.experimental import pallas as pl
from jax.experimental.pallas import tpu as pltpu


def _heatmap_kernel(ax_ref, ay_ref, xc_ref, yc_ref, o_ref, *, neg_inv_2s2):
    # ax_ref, ay_ref: (1, G, 1)   per-point attend pixel coords (sublane vectors)
    # xc_ref, yc_ref: (1, HW)     constant flattened meshgrid rows (lane vectors)
    # o_ref:          (1, G, HW)  G heatmaps, lane-dense (HW on lanes)
    ax = ax_ref[0]                     # (G, 1)
    ay = ay_ref[0]                     # (G, 1)
    xc = xc_ref[...]                   # (1, HW)
    yc = yc_ref[...]                   # (1, HW)

    dx = xc - ax                       # (G, HW)  lane+sublane broadcast
    dy = yc - ay                       # (G, HW)
    d2 = dx * dx + dy * dy
    o_ref[0] = jnp.exp(d2 * neg_inv_2s2)


def heatmap(x, img_height, img_width, sigma=5.0, points_per_step=None):
    """x: (B, P, 2) float32 in [-1, 1] -> (B, P, H, W) float32 heatmaps."""
    B, P, _ = x.shape
    H, W = int(img_height), int(img_width)
    BP = B * P
    HW = H * W

    xf = x.reshape(BP, 2).astype(jnp.float32)
    # Attend pixel coordinates (note the intentional H/W pairing from the source).
    ax = (xf[:, 0] + 1.0) * ((H - 1) / 2.0)          # (BP,)
    ay = (xf[:, 1] + 1.0) * ((W - 1) / 2.0)          # (BP,)

    # --- choose G = heatmaps per grid step -------------------------------------
    bytes_per_point = HW * 4
    if points_per_step is not None:
        G = max(1, int(points_per_step))
    else:
        vmem_block_cap = 4 * 1024 * 1024             # ~4 MiB out block (x2 buffers)
        g_cap = max(1, vmem_block_cap // bytes_per_point)
        target_steps = 4 if BP >= 4 else 1           # keep both v7x cores busy
        G = max(1, min(g_cap, pl.cdiv(BP, target_steps)))
    n_chunks = pl.cdiv(BP, G)
    BPp = n_chunks * G

    if BPp != BP:                                     # pad ragged tail (discarded)
        pad = BPp - BP
        ax = jnp.concatenate([ax, jnp.zeros((pad,), jnp.float32)])
        ay = jnp.concatenate([ay, jnp.zeros((pad,), jnp.float32)])

    ax3 = ax.reshape(n_chunks, G, 1)
    ay3 = ay.reshape(n_chunks, G, 1)

    # Flattened meshgrid rows: col = i*W + j  ->  X = j+1, Y = i+1.
    jj = jnp.arange(HW, dtype=jnp.int32)
    xcoord = ((jj % W) + 1).astype(jnp.float32).reshape(1, HW)
    ycoord = ((jj // W) + 1).astype(jnp.float32).reshape(1, HW)

    neg_inv_2s2 = -1.0 / (2.0 * float(sigma) * float(sigma))
    kernel = functools.partial(_heatmap_kernel, neg_inv_2s2=neg_inv_2s2)

    out = pl.pallas_call(
        kernel,
        out_shape=jax.ShapeDtypeStruct((n_chunks, G, HW), jnp.float32),
        grid=(n_chunks,),
        in_specs=[
            pl.BlockSpec((1, G, 1), lambda i: (i, 0, 0)),    # ax
            pl.BlockSpec((1, G, 1), lambda i: (i, 0, 0)),    # ay
            pl.BlockSpec((1, HW), lambda i: (0, 0)),         # X row (constant)
            pl.BlockSpec((1, HW), lambda i: (0, 0)),         # Y row (constant)
        ],
        out_specs=pl.BlockSpec((1, G, HW), lambda i: (i, 0, 0)),
        compiler_params=pltpu.CompilerParams(
            dimension_semantics=("parallel",)
        ),
    )(ax3, ay3, xcoord, ycoord)

    out = out.reshape(BPp, H, W)[:BP].reshape(B, P, H, W)
    return out


def _heatmap_ref(x, img_height, img_width, sigma=5.0):
    # Pure-JAX reference mirroring the PyTorch loops (vectorized), incl. division.
    X = jnp.arange(1, img_width + 1, dtype=jnp.float32)[None, :].repeat(img_height, 0)
    Y = jnp.arange(1, img_height + 1, dtype=jnp.float32)[:, None].repeat(img_width, 1)
    ax = (x[..., 0] + 1.0) * (img_height - 1) / 2.0   # (B, P)
    ay = (x[..., 1] + 1.0) * (img_width - 1) / 2.0    # (B, P)
    X_ = X[None, None] - ax[..., None, None]
    Y_ = Y[None, None] - ay[..., None, None]
    D2 = X_ * X_ + Y_ * Y_
    return jnp.exp(-(D2 / (2.0 * sigma * sigma)))


if __name__ == "__main__":
    B, P = 2, 4
    H, W = 16, 16
    sigma = 5.0

    key = jax.random.PRNGKey(0)
    # Points in [-1, 1], matching the module's expected input range.
    x = jax.random.uniform(key, (B, P, 2), dtype=jnp.float32, minval=-1.0, maxval=1.0)

    out = heatmap(x, H, W, sigma)
    out = jax.block_until_ready(out)

    ref = _heatmap_ref(x, H, W, sigma)
    assert out.shape == (B, P, H, W)
    assert jnp.allclose(out, ref, atol=1e-5, rtol=1e-5)

    print("KERNEL_OK")
</pallas_src>

<mosaic_0001>
module attributes {stable_mosaic.version = 11 : i64} {
  func.func @_heatmap_kernel(%arg0: i32, %arg1: memref<1x2x1xf32, #tpu.memory_space<vmem>>, %arg2: memref<1x2x1xf32, #tpu.memory_space<vmem>>, %arg3: memref<1x256xf32, #tpu.memory_space<vmem>>, %arg4: memref<1x256xf32, #tpu.memory_space<vmem>>, %arg5: memref<1x2x256xf32, #tpu.memory_space<vmem>>) attributes {dimension_semantics = [#tpu.dimension_semantics<parallel>], iteration_bounds = array<i64: 4>, scalar_prefetch = 0 : i64, scratch_operands = 0 : i64, tpu.core_type = #tpu.core_type<tc>, window_params = [{transform_indices = @transform_0, window_bounds = array<i64: 1, 2, 1>}, {transform_indices = @transform_1, window_bounds = array<i64: 1, 2, 1>}, {pipeline_mode = #tpu.pipeline_mode<synchronous>, transform_indices = @transform_2, window_bounds = array<i64: 1, 256>}, {pipeline_mode = #tpu.pipeline_mode<synchronous>, transform_indices = @transform_3, window_bounds = array<i64: 1, 256>}, {transform_indices = @transform_4, window_bounds = array<i64: 1, 2, 256>}]} {
    %c0 = arith.constant 0 : index
    %c0_0 = arith.constant 0 : index
    %c0_1 = arith.constant 0 : index
    %0 = vector.load %arg1[%c0, %c0_0, %c0_1] : memref<1x2x1xf32, #tpu.memory_space<vmem>>, vector<1x2x1xf32>
    %1 = vector.shape_cast %0 : vector<1x2x1xf32> to vector<2x1xf32>
    %c0_2 = arith.constant 0 : index
    %c0_3 = arith.constant 0 : index
    %c0_4 = arith.constant 0 : index
    %2 = vector.load %arg2[%c0_2, %c0_3, %c0_4] : memref<1x2x1xf32, #tpu.memory_space<vmem>>, vector<1x2x1xf32>
    %3 = vector.shape_cast %2 : vector<1x2x1xf32> to vector<2x1xf32>
    %c0_5 = arith.constant 0 : index
    %c0_6 = arith.constant 0 : index
    %4 = vector.load %arg3[%c0_5, %c0_6] : memref<1x256xf32, #tpu.memory_space<vmem>>, vector<1x256xf32>
    %c0_7 = arith.constant 0 : index
    %c0_8 = arith.constant 0 : index
    %5 = vector.load %arg4[%c0_7, %c0_8] : memref<1x256xf32, #tpu.memory_space<vmem>>, vector<1x256xf32>
    %6 = vector.broadcast %4 : vector<1x256xf32> to vector<2x256xf32>
    %7 = vector.broadcast %1 : vector<2x1xf32> to vector<2x256xf32>
    %8 = arith.subf %6, %7 : vector<2x256xf32>
    %9 = vector.broadcast %5 : vector<1x256xf32> to vector<2x256xf32>
    %10 = vector.broadcast %3 : vector<2x1xf32> to vector<2x256xf32>
    %11 = arith.subf %9, %10 : vector<2x256xf32>
    %12 = arith.mulf %8, %8 : vector<2x256xf32>
    %13 = arith.mulf %11, %11 : vector<2x256xf32>
    %14 = arith.addf %12, %13 : vector<2x256xf32>
    %cst = arith.constant -2.000000e-02 : f32
    %15 = vector.broadcast %cst : f32 to vector<2x256xf32>
    %16 = arith.mulf %14, %15 : vector<2x256xf32>
    %17 = math.exp %16 : vector<2x256xf32>
    %c0_9 = arith.constant 0 : index
    %c0_10 = arith.constant 0 : index
    %c0_11 = arith.constant 0 : index
    %18 = vector.load %arg5[%c0_9, %c0_10, %c0_11] : memref<1x2x256xf32, #tpu.memory_space<vmem>>, vector<1x2x256xf32>
    %19 = vector.shape_cast %18 : vector<1x2x256xf32> to vector<2x256xf32>
    %20 = vector.shape_cast %17 : vector<2x256xf32> to vector<1x2x256xf32>
    tpu.vector_store %arg5[%c0_9, %c0_10, %c0_11], %20 {strides = array<i32>} : memref<1x2x256xf32, #tpu.memory_space<vmem>>, vector<1x2x256xf32>,
    return
  }
  func.func @transform_0(%arg0: i32) -> (i32, i32, i32) {
    %c0_i32 = arith.constant 0 : i32
    %c0_i32_0 = arith.constant 0 : i32
    %c0_i32_1 = arith.constant 0 : i32
    return %arg0, %c0_i32, %c0_i32_0 : i32, i32, i32
  }
  func.func @transform_1(%arg0: i32) -> (i32, i32, i32) {
    %c0_i32 = arith.constant 0 : i32
    %c0_i32_0 = arith.constant 0 : i32
    %c0_i32_1 = arith.constant 0 : i32
    return %arg0, %c0_i32, %c0_i32_0 : i32, i32, i32
  }
  func.func @transform_2(%arg0: i32) -> (i32, i32) {
    %c0_i32 = arith.constant 0 : i32
    %c0_i32_0 = arith.constant 0 : i32
    %c0_i32_1 = arith.constant 0 : i32
    return %c0_i32, %c0_i32_0 : i32, i32
  }
  func.func @transform_3(%arg0: i32) -> (i32, i32) {
    %c0_i32 = arith.constant 0 : i32
    %c0_i32_0 = arith.constant 0 : i32
    %c0_i32_1 = arith.constant 0 : i32
    return %c0_i32, %c0_i32_0 : i32, i32
  }
  func.func @transform_4(%arg0: i32) -> (i32, i32, i32) {
    %c0_i32 = arith.constant 0 : i32
    %c0_i32_0 = arith.constant 0 : i32
    %c0_i32_1 = arith.constant 0 : i32
    return %arg0, %c0_i32, %c0_i32_0 : i32, i32, i32
  }
}

</mosaic_0001>

<bundles_post_ra>
// kernel: tpu_custom_call.1
= control target key start
LH: loop header
LB: loop body
LE: loop exit
PB: predicated region body
PF: predicated region fallthrough
CT: control target
= control target key end

     0   :  { %9 = vsyncpa [#allocation3], 0  ;;  %s604_s0 = inlined_call_operand.vmem [shape: f32[4,2,1], index: 0, kind: input, shape index: {}]   ;;  %s605_s1 = inlined_call_operand.vmem [shape: f32[4,2,1], index: 1, kind: input, shape index: {}]   ;;  %s606_s2 = inlined_call_operand.vmem [shape: f32[1,256], index: 2, kind: input, shape index: {}]   ;;  %s607_s3 = inlined_call_operand.vmem [shape: f32[1,256], index: 3, kind: input, shape index: {}]   ;;  %s608_s4 = inlined_call_operand.hbm [shape: f32[4,2,256], index: 4, kind: output, shape index: {}]  }
   0x1   :  { %11 = vsyncpa [#allocation3 + $0x1], 0  ;;  %s508_s15 = smov 0   ;;  %s510_s16 = smov 0  }
   0x2   :  { %s512_s17 = smov 0   ;;  %s514_s18 = smov 0  }
   0x3 LB: > { %s529_s19 = sadd.s32 4294967295, %s479_s18   ;;  %s360_s20 = sadd.s32 4294967294, %s479_s18   ;;  %s479_s18 = sphi %s514_s18, %s614_s18   ;;  %s475_s17 = sphi %s512_s17, %s613_s17   ;;  %s471_s16 = sphi %s510_s16, %s612_s16   ;;  %s467_s15 = sphi %s508_s15, %s611_s15  }
   0x4   : > { %s533_s21 = sadd.s32 1, %s479_s18   ;;  %s118_s22 = sadd.s32 1, %s475_s17 }
   0x5   : > { %s115_s23 = ssub.s32 %s479_s18, %s533_s21  ;;  %p128_p0 = scmp.ne.s32.totalorder %s475_s17, %s471_s16 }
   0x6   : > { %p116_p1 = scmp.eq.s32.totalorder %s115_s23, 0  ;;  %p129_p2 = scmp.eq.s32.totalorder %s529_s19, 3 }
   0x7   : > { %p134_p3 = scmp.ne.s32.totalorder %s471_s16, %s467_s15  ;;  %p135_p4 = scmp.eq.s32.totalorder %s360_s20, 3 }
   0x8   : > { %s544_s24 = scalar_select %p116_p1, %s475_s17, %s118_s22  }
   0x9   : > { %p546_p5 = por %p129_p2, %p128_p0  ;;  %p550_p6 = por %p135_p4, %p134_p3 }
   0xa   : > { %p363_p7 = scmp.ge.s32.totalorder %s479_s18, 1  ;;  %p173_p8 = scmp.lt.s32.totalorder %s479_s18, 5 }
   0xc   : > { %p174_p9 = pnand %p363_p7, %p173_p8 }
   0xd   : > { %p202_p10 = scmp.lt.s32.totalorder (!%p174_p9), %s529_s19, 3  ;;  %s199_s13 = sand.u32 (!%p174_p9), 1, %s471_s16  }
   0xe   : > { %177 = sbr.rel (%p174_p9) target bundleno = 192 (0xc0), region = 36  ;;  %s364_s14 = sshll.u32 (!%p174_p9), %s199_s13, 2 }
   0xf   : > { %s373_s20 = sshll.u32 (!%p174_p9), %s529_s19, 6  ;;  %s201_s22 = scalar_lea.vmem (!%p174_p9), [#allocation2], %s364_s14 }
  0x10   : > { %s289_s23 = sshll.u32 (!%p174_p9), %s201_s22, 4  ;;  %s287_s29 = scalar_lea.hbm (!%p174_p9), %s608_s4, %s373_s20  ;;  %s290_s23 = int_to_ptr.vmem [resolvable:$true] %s289_s23 }
  0x11   : > { %s275_s30 = scalar_lea.sflag (!%p174_p9), [#allocation3], %s199_s13  ;;  %s482_s6 = smov (!%p174_p9), [#allocation2]  }
  0x12   : > { %s423_s7 = sshll.u32 (!%p174_p9), %s482_s6, 4  ;;  %s424_s7 = int_to_ptr.vmem [resolvable:$false] %s423_s7 }
  0x13   : > { %v481_v0 = vmov 0   ;;  %s203_s27 = scalar_select %p202_p10, %s529_s19, 3  ;;  %v215_v3 = vlaneseq  ;;  %v212_v7 = vld [vmem:[%s606_s2] sm:$0x3] }
  0x14   : > { %414 = vset.pattern.permute.xlu0 %v481_v0  ;;  %v213_v8 = vld [vmem:[%s607_s3] sm:$0x3]  ;;  %s425_s19 = scalar_lea.vmem %s424_s7, 128  ;;  %p426_p0 = scmp.lt.s32.totalorder %s290_s23, %s424_s7 }
  0x15   : > { %s365_s28 = sshll.u32 %s203_s27, 1  ;;  %v216_v4 = vshrl.u32 %v215_v3, 7 }
  0x16   : > { %s205_s5 = scalar_lea.vmem %s604_s0, %s365_s28  ;;  %s209_s8 = scalar_lea.vmem %s605_s1, %s365_s28 }
  0x17   : > { %v210_v1 = vld [vmem:[%s205_s5] sm:$0x3]  ;;  %v217_v5 = vsub.s32 0, %v216_v4  ;;  %v221_v6 = vsub.s32 1, %v216_v4  ;;  %s419_s5 = scalar_lea.vmem %s290_s23, 64 }
  0x18   : > { %227 = vperm.xlu0 %414, %v210_v1   ;;  %v211_v2 = vld [vmem:[%s209_s8] sm:$0x3]  ;;  %p420_p11 = scmp.ne.s32.totalorder %s290_s23, %s419_s5  ;;  %p427_p1 = scmp.lt.s32.totalorder %s425_s19, %s419_s5 }
  0x19   : > { %v218_v9 = vrot.slane %v212_v7, %v217_v5  ;;  %v222_v10 = vrot.slane %v212_v7, %v221_v6  ;;  %v236_v12 = vrot.slane %v213_v8, %v217_v5  ;;  %v240_v13 = vrot.slane %v213_v8, %v221_v6 }
  0x1a   : > { %p421_p12 = pnand %p420_p11, %p546_p5  ;;  %p428_p2 = por %p427_p1, %p426_p0 }
  0x1c   : > { %245 = vperm.xlu0 %414, %v211_v2   ;;  %p422_p13 = pneg %p421_p12 }
  0x1e   : > { %p429_p3 = pnand %p428_p2, %p422_p13 }
  0x93   : > { %v228_v11 = vpop.permute.xlu0 %227 }
  0x94   : > { %v230_v14 = vsub.f32 %v218_v9, %v228_v11  ;;  %v231_v15 = vsub.f32 %v222_v10, %v228_v11 }
  0x96   : > { %v250_v19 = vmul.f32 %v230_v14, %v230_v14  ;;  %v251_v20 = vmul.f32 %v231_v15, %v231_v15 }
  0x97   : > { %v246_v16 = vpop.permute.xlu0 %245 }
  0x98   : > { %v248_v17 = vsub.f32 %v236_v12, %v246_v16  ;;  %v249_v18 = vsub.f32 %v240_v13, %v246_v16 }
  0x9a   : > { %v252_v21 = vmul.f32 %v248_v17, %v248_v17  ;;  %v253_v22 = vmul.f32 %v249_v18, %v249_v18 }
  0x9c   : > { %v254_v23 = vadd.f32 %v252_v21, %v250_v19  ;;  %v255_v24 = vadd.f32 %v253_v22, %v251_v20 }
  0x9e   : > { %v256_v25 = vmul.f32 -0.02, %v254_v23  ;;  %v257_v26 = vmul.f32 -0.02, %v255_v24 }
  0xa0   : > { %v258_v27 = vmul.f32 1.442695, %v256_v25  ;;  %v260_v28 = vmul.f32 1.442695, %v257_v26 }
  0xa2   : > { %415 = vpow2.f32 %v258_v27 }
  0xa3   : > { %417 = vpow2.f32 %v260_v28 }
  0xaf   : > { %v416_v29 = vpop.eup %415 }
  0xb0   : > { %v418_v30 = vpop.eup %417 }
  0xb1   : > { %v264_v31 = vcombine.low %v416_v29, %v418_v30 }
  0xb3   : > { %367 = vst.sshfl [vmem:[%s201_s22] sm:$0x33 pattern:$0x76325410] %v264_v31 }
  0xb4   : > { %432 = shalt.err (!%p429_p3)
}
  0xb5   : > { %s433_s8 = scalar_lea.hbm %s287_s29, 64  ;;  %s437_s11 = scalar_lea.hbm %s608_s4, 256 }
  0xb6   : > { %p434_p4 = scmp.ne.s32.totalorder %s287_s29, %s433_s8  ;;  %p438_p9 = scmp.lt.s32.totalorder %s287_s29, %s608_s4 }
  0xb7   : > { %p439_p10 = scmp.lt.s32.totalorder %s437_s11, %s433_s8 }
  0xb8   : > { %p435_p7 = pnand %p434_p4, %p546_p5 }
  0xb9   : > { %p440_p11 = por %p439_p10, %p438_p9 }
  0xba   : > { %p436_p8 = pneg %p435_p7 }
  0xbc   : > { %p441_p12 = pnand %p440_p11, %p436_p8 }
  0xbe   : > { %444 = shalt.err (!%p441_p12)
}
  0xbf   : > { %374 = dma.vmem_to_hbm [thread:$0]  (%p546_p5), %s290_s23, 64, %s287_s29, %s275_s30  }
  0xc0 PF: > { %p380_p13 = scmp.ge.s32.totalorder %s479_s18, 2  ;;  %s301_s14 = sand.u32 1, %s467_s15  }
  0xc1   : > { %s302_s20 = scalar_lea.sflag [#allocation3], %s301_s14 }
  0xc2   : > { %p377_p0 = pnand %p380_p13, %p550_p6 }
  0xc4   : > { %p378_p1 = pneg %p377_p0 }
  0xc6   : > { %462 = dma.done.wait (%p378_p1), %s302_s20, 64  }
  0xc7   : > { %464 = vsyncadd (%p378_p1), %s302_s20, 4294967232  ;;  %p14_p2 = scmp.ge.s32.totalorder %s533_s21, 6   ;;  %s611_s15 = smov %s471_s16 }
  0xc8   : > { %s612_s16 = smov %s475_s17  ;;  %s613_s17 = smov %s544_s24 }
  0xc9   : > { %s614_s18 = smov %s533_s21  ;;  %16 = sbr.rel (!%p14_p2) target bundleno = 3 (0x3), region = 74 }
  0xce   :  { %307 = vsyncpa [#allocation3], 1 }
  0xcf   :  { %309 = vsyncpa [#allocation3 + $0x1], 1 }

</bundles_post_ra>
